<compile_context>
chip_gen: v6e
topology: v6e:2x2x1
jax: 0.10.0
libtpu: 0.0.40
codegen_flags: <defaults>
</compile_context>

<pallas_src>
import functools

import jax
import jax.numpy as jnp
from jax.experimental import pallas as pl
from jax.experimental.pallas import tpu as pltpu


_F32 = 4  # bytes per f32
_TILE_LADDER = (2048, 1024, 512, 256, 128)  # 256-multiples preferred for v6e/v7x MXU lanes


def _vmem_capacity_bytes():
    """Physical VMEM of the local chip; conservative fallback if the query fails."""
    try:
        return int(pltpu.get_tpu_info().vmem_capacity_bytes)
    except Exception:  # e.g. interpret mode / very old runtime
        return 64 * 1024 * 1024  # v7x per-TensorCore size: safe lower bound


def _plan_tiles(Cin, Cout, T):
    """Pick the time tile TT and a matching vmem_limit_bytes for the current chip.

    Budget rule: the worst per-pass footprint (double/triple-buffered tiles + resident
    accumulators/params) must stay under half of physical VMEM, leaving headroom for
    compiler-internal scratch.
    """
    cap = _vmem_capacity_bytes()
    budget = cap // 2

    def need(tt):
        # pass 1 (stats): x double-buffered + resident accumulators (Gram or moments).
        stats_gram = 2 * Cin * tt * _F32 + 2 * (Cin * Cin + Cin) * _F32
        stats_mom = 2 * Cin * tt * _F32 + 2 * Cout * Cin * _F32 + 4 * Cout * _F32
        stats = stats_gram if Cin <= Cout else stats_mom
        # pass 2 (apply): x triple-buffered (pl.Buffered(3)) + out double-buffered + params.
        apply_ = 3 * Cin * tt * _F32 + 2 * Cout * tt * _F32 + 2 * (Cout * Cin + Cout) * _F32
        return max(stats, apply_)

    if T < 128:
        tt = T  # lane-sparse; only reached when the fused small path is too large
    else:
        tt = 128  # last-resort fallback
        # TODO(synk): for extremely large Cin (Cin^2 f32 > VMEM budget) a blocked Gram
        # would be needed; not handled here.
        for cand in _TILE_LADDER:
            if cand <= T and need(cand) <= budget:
                tt = cand
                break

    vmem_limit = int(min(7 * cap // 8, max(4 * need(tt), 32 * 1024 * 1024)))
    return tt, vmem_limit


# ----------------------------- pass 1: analytic BN statistics -----------------------------


def _make_gram_stats_kernel(TT, T, nt, nt_half):
    """Accumulate sum_t x_t and the Cin x Cin Gram sum_t x_t x_t^T over all (B, T)."""
    tail = (T % TT) != 0

    def kernel(x_ref, gram_ref, s1_ref):
        h = pl.program_id(0)  # T-half (parallel; feeds both v7x TensorCores)
        b = pl.program_id(1)  # batch (reduced in-kernel)
        t = pl.program_id(2)  # tile within the half (reduced in-kernel)

        @pl.when((b == 0) & (t == 0))
        def _init():
            gram_ref[...] = jnp.zeros_like(gram_ref)
            s1_ref[...] = jnp.zeros_like(s1_ref)

        g = h * nt_half + t  # global tile index

        @pl.when(g < nt)  # skip the duplicated clamped tile when nt is odd
        def _accumulate():
            x = x_ref[0]                                             # (Cin, TT)
            if tail:  # zero lanes beyond T in the partial tail tile
                col = jax.lax.broadcasted_iota(jnp.int32, x.shape, 1)
                x = jnp.where(g * TT + col < T, x, 0.0)
            # x @ x.T: contract both operands on the lane axis (no materialized transpose).
            gram_ref[0] += jax.lax.dot_general(
                x, x, dimension_numbers=(((1,), (1,)), ((), ())),
                preferred_element_type=jnp.float32)
            s1_ref[0] += jnp.sum(x, axis=-1, keepdims=True)

    return kernel


def _make_moment_stats_kernel(TT, T, nt, nt_half):
    """Accumulate per-output-channel sum(y) and sum(y^2), y = W x (used when Cin > Cout)."""
    tail = (T % TT) != 0

    def kernel(x_ref, w_ref, s1_ref, s2_ref):
        h = pl.program_id(0)
        b = pl.program_id(1)
        t = pl.program_id(2)

        @pl.when((b == 0) & (t == 0))
        def _init():
            s1_ref[...] = jnp.zeros_like(s1_ref)
            s2_ref[...] = jnp.zeros_like(s2_ref)

        g = h * nt_half + t

        @pl.when(g < nt)
        def _accumulate():
            x = x_ref[0]                                             # (Cin, TT)
            if tail:
                col = jax.lax.broadcasted_iota(jnp.int32, x.shape, 1)
                x = jnp.where(g * TT + col < T, x, 0.0)
            y = jnp.dot(w_ref[...], x, preferred_element_type=jnp.float32)  # (Cout, TT)
            s1_ref[0] += jnp.sum(y, axis=-1, keepdims=True)
            s2_ref[0] += jnp.sum(y * y, axis=-1, keepdims=True)

    return kernel


# ----------------------------- pass 2: fused matmul + BN + ReLU ---------------------------


def _apply_kernel(x_ref, w_ref, shift_ref, o_ref):
    # x_ref     : (1, Cin, TT)
    # w_ref     : (Cout, Cin)   BN-scale-folded weight  diag(gamma/std) @ W
    # shift_ref : (Cout, 1)     beta - scale * (W @ mean_x)
    # o_ref     : (1, Cout, TT) lane-dense output tile
    # TODO(synk): for compute-bound configs (Cin, Cout >= ~256) cast x/w to bf16 here
    # (keeping f32 accumulation) to hit the higher bf16 MXU rate.
    y = jnp.dot(w_ref[...], x_ref[0], preferred_element_type=jnp.float32)  # (Cout, TT)
    o_ref[0] = jnp.maximum(y + shift_ref[...], 0.0).astype(o_ref.dtype)


# ----------------------------- small-T fused single-call path -----------------------------


def _fused_small_kernel(x_ref, w_ref, gamma_ref, beta_ref, o_ref, *, eps):
    # Whole problem resident in VMEM: exact (centered) batch statistics in one pass.
    y = jnp.dot(w_ref[...], x_ref[...], preferred_element_type=jnp.float32)  # (Cout, B*T)
    inv_n = 1.0 / y.shape[1]
    mu = jnp.sum(y, axis=1, keepdims=True) * inv_n
    d = y - mu
    var = jnp.sum(d * d, axis=1, keepdims=True) * inv_n
    o_ref[...] = jnp.maximum(
        d * jax.lax.rsqrt(var + eps) * gamma_ref[...] + beta_ref[...], 0.0
    ).astype(o_ref.dtype)


def _fused_small_forward(x, weight, gamma, beta, eps):
    B, Cin, T = x.shape
    Cout = weight.shape[0]
    N = B * T
    # One-time channels-major flatten: the kernel's lane axis becomes B*T, the densest
    # layout this tiny problem allows (lane-dense path for T < 128).
    x2 = jnp.transpose(x, (1, 0, 2)).reshape(Cin, N)
    out2 = pl.pallas_call(
        functools.partial(_fused_small_kernel, eps=float(eps)),
        out_shape=jax.ShapeDtypeStruct((Cout, N), x.dtype),
        grid=(1,),
        in_specs=[pl.BlockSpec((Cin, N), lambda i: (0, 0)),
                  pl.BlockSpec((Cout, Cin), lambda i: (0, 0)),
                  pl.BlockSpec((Cout, 1), lambda i: (0, 0)),
                  pl.BlockSpec((Cout, 1), lambda i: (0, 0))],
        out_specs=pl.BlockSpec((Cout, N), lambda i: (0, 0)),
    )(x2, weight, gamma.reshape(Cout, 1), beta.reshape(Cout, 1))
    return jnp.transpose(out2.reshape(Cout, B, T), (1, 0, 2))


# ----------------------------------- public forward ---------------------------------------


def linlayer_forward(x, weight, bias, gamma, beta, eps=1e-5):
    """x: (B, in_dim, T) f32. weight: (out_dim, in_dim). Returns (B, out_dim, T)."""
    del bias  # Cancels exactly under training-mode BN mean subtraction (see header).
    B, Cin, T = x.shape
    Cout = weight.shape[0]
    N = B * T

    # Small / lane-sparse problems (T < 128) that fit comfortably in VMEM: fused path.
    small_bytes = _F32 * (Cin * N + Cout * N + Cout * Cin + 2 * Cout)
    if T < 128 and small_bytes <= 4 * 1024 * 1024:
        return _fused_small_forward(x, weight, gamma, beta, eps)

    TT, vmem_limit = _plan_tiles(Cin, Cout, T)
    nt = pl.cdiv(T, TT)       # partial tail tile is lane-masked in the stats kernels
    nt_half = pl.cdiv(nt, 2)  # two "parallel" halves -> both v7x TensorCores stay busy

    x_idx = lambda h, b, t: (b, 0, jnp.minimum(h * nt_half + t, nt - 1))
    stats_params = pltpu.CompilerParams(
        dimension_semantics=("parallel", "arbitrary", "arbitrary"),
        vmem_limit_bytes=vmem_limit)

    # ---- Pass 1: analytic BN statistics (reads x once) ----------------------------
    if Cin <= Cout:
        # Gram trick: mean_y = W mu_x, var_y[c] = w_c^T Cov(x) w_c.
        gram_h, s1_h = pl.pallas_call(
            _make_gram_stats_kernel(TT, T, nt, nt_half),
            out_shape=(jax.ShapeDtypeStruct((2, Cin, Cin), jnp.float32),
                       jax.ShapeDtypeStruct((2, Cin, 1), jnp.float32)),
            grid=(2, B, nt_half),
            in_specs=[pl.BlockSpec((1, Cin, TT), x_idx)],
            out_specs=[pl.BlockSpec((1, Cin, Cin), lambda h, b, t: (h, 0, 0)),
                       pl.BlockSpec((1, Cin, 1), lambda h, b, t: (h, 0, 0))],
            compiler_params=stats_params,
            cost_estimate=pl.CostEstimate(
                flops=2 * N * Cin * Cin + N * Cin, transcendentals=0,
                bytes_accessed=_F32 * (N * Cin + 2 * Cin * Cin + 2 * Cin)),
        )(x)
        mu_x = jnp.sum(s1_h, axis=0)[:, 0] / N                     # (Cin,)
        # TODO(synk): raw-moment covariance can lose precision when |mean(x)| >> std(x);
        # a compensated / mean-shifted accumulation would be needed for such inputs.
        cov = jnp.sum(gram_h, axis=0) / N - jnp.outer(mu_x, mu_x)  # biased covariance
        mean_y = weight @ mu_x                                     # (Cout,)
        var_y = jnp.sum((weight @ cov) * weight, axis=1)           # (Cout,)
    else:
        # Cin > Cout: cheaper to accumulate per-output-channel moments of y = W x directly.
        s1_h, s2_h = pl.pallas_call(
            _make_moment_stats_kernel(TT, T, nt, nt_half),
            out_shape=(jax.ShapeDtypeStruct((2, Cout, 1), jnp.float32),
                       jax.ShapeDtypeStruct((2, Cout, 1), jnp.float32)),
            grid=(2, B, nt_half),
            in_specs=[pl.BlockSpec((1, Cin, TT), x_idx),
                      pl.BlockSpec((Cout, Cin), lambda h, b, t: (0, 0))],
            out_specs=[pl.BlockSpec((1, Cout, 1), lambda h, b, t: (h, 0, 0)),
                       pl.BlockSpec((1, Cout, 1), lambda h, b, t: (h, 0, 0))],
            compiler_params=stats_params,
            cost_estimate=pl.CostEstimate(
                flops=2 * N * Cin * Cout + 3 * N * Cout, transcendentals=0,
                bytes_accessed=_F32 * (N * Cin + Cout * Cin + 4 * Cout)),
        )(x, weight)
        mean_y = jnp.sum(s1_h, axis=0)[:, 0] / N                   # (Cout,)
        var_y = jnp.sum(s2_h, axis=0)[:, 0] / N - mean_y * mean_y  # biased variance

    # Tiny (Cout x Cin) parameter math: fold the BN affine into the matmul (glue).
    scale = gamma * jax.lax.rsqrt(var_y + eps)                     # (Cout,)
    w_s = weight * scale[:, None]                                  # (Cout, Cin)
    shift = (beta - mean_y * scale).reshape(Cout, 1)               # (Cout, 1)

    # ---- Pass 2: fully parallel fused matmul + affine + ReLU ----------------------
    x_spec_kwargs = {}
    if B * nt >= 3:  # deepen the streamed-input pipeline only when there is enough work
        x_spec_kwargs["pipeline_mode"] = pl.Buffered(3)
    out = pl.pallas_call(
        _apply_kernel,
        out_shape=jax.ShapeDtypeStruct((B, Cout, T), x.dtype),
        grid=(B, nt),
        in_specs=[pl.BlockSpec((1, Cin, TT), lambda b, t: (b, 0, t), **x_spec_kwargs),
                  pl.BlockSpec((Cout, Cin), lambda b, t: (0, 0)),
                  pl.BlockSpec((Cout, 1), lambda b, t: (0, 0))],
        out_specs=pl.BlockSpec((1, Cout, TT), lambda b, t: (b, 0, t)),
        compiler_params=pltpu.CompilerParams(
            dimension_semantics=("parallel", "parallel"),
            vmem_limit_bytes=vmem_limit),
        cost_estimate=pl.CostEstimate(
            flops=2 * N * Cin * Cout, transcendentals=0,
            bytes_accessed=_F32 * (N * Cin + N * Cout + Cout * Cin + Cout)),
    )(x, w_s, shift)
    return out


# ----------------------------------------- demo -------------------------------------------


def _reference(x, weight, bias, gamma, beta, eps=1e-5):
    """Pure-JAX reference of the exact PyTorch semantics (bias included; it cancels)."""
    y = jnp.einsum("oc,bct->bot", weight, x) + bias[None, :, None]
    mean = jnp.mean(y, axis=(0, 2), keepdims=True)
    var = jnp.mean((y - mean) ** 2, axis=(0, 2), keepdims=True)
    return jnp.maximum((y - mean) * jax.lax.rsqrt(var + eps) * gamma[None, :, None]
                       + beta[None, :, None], 0.0)


if __name__ == "__main__":
    key = jax.random.PRNGKey(0)

    # (B, Cin, T, Cout): first entry is the spec's small shape (fused small-T path); the
    # rest exercise the tiled path: Gram stats (Cin<=Cout) with/without a masked partial
    # tail tile, and per-channel-moment stats (Cin>Cout).
    cases = [
        (2, 16, 8, 32),     # fused small-T path (module's implied demo shape)
        (2, 16, 512, 32),   # tiled, Gram stats, T divisible by the tile
        (2, 24, 400, 40),   # tiled, Gram stats, masked partial tail tile
        (3, 48, 200, 16),   # tiled, moment stats (Cin > Cout), masked tail, Buffered(3)
    ]

    for B, Cin, T, Cout in cases:
        key, kx, kw, kb, kg, kbt = jax.random.split(key, 6)
        x = jax.random.normal(kx, (B, Cin, T), dtype=jnp.float32)
        bound = 1.0 / (Cin ** 0.5)  # PyTorch nn.Linear default init range
        weight = jax.random.uniform(kw, (Cout, Cin), jnp.float32, -bound, bound)
        bias = jax.random.uniform(kb, (Cout,), jnp.float32, -bound, bound)
        # Non-default BN affine to exercise the gamma/beta fold (a fresh module uses 1/0).
        gamma = jax.random.uniform(kg, (Cout,), jnp.float32, 0.5, 1.5)
        beta = jax.random.uniform(kbt, (Cout,), jnp.float32, -0.5, 0.5)

        out = linlayer_forward(x, weight, bias, gamma, beta)
        jax.block_until_ready(out)
        assert out.shape == (B, Cout, T), (out.shape, (B, Cout, T))

        ref = _reference(x, weight, bias, gamma, beta)
        err = float(jnp.max(jnp.abs(out - ref)))
        assert jnp.allclose(out, ref, atol=3e-4, rtol=3e-4), (B, Cin, T, Cout, err)

    print("KERNEL_OK")
</pallas_src>

<mosaic_0001>
module attributes {stable_mosaic.version = 11 : i64} {
  func.func @_fused_small_kernel(%arg0: i32, %arg1: memref<16x16xf32, #tpu.memory_space<vmem>>, %arg2: memref<32x16xf32, #tpu.memory_space<vmem>>, %arg3: memref<32x1xf32, #tpu.memory_space<vmem>>, %arg4: memref<32x1xf32, #tpu.memory_space<vmem>>, %arg5: memref<32x16xf32, #tpu.memory_space<vmem>>) attributes {dimension_semantics = [#tpu.dimension_semantics<arbitrary>], iteration_bounds = array<i64: 1>, scalar_prefetch = 0 : i64, scratch_operands = 0 : i64, tpu.core_type = #tpu.core_type<tc>, window_params = [{pipeline_mode = #tpu.pipeline_mode<synchronous>, transform_indices = @transform_0, window_bounds = array<i64: 16, 16>}, {pipeline_mode = #tpu.pipeline_mode<synchronous>, transform_indices = @transform_1, window_bounds = array<i64: 32, 16>}, {pipeline_mode = #tpu.pipeline_mode<synchronous>, transform_indices = @transform_2, window_bounds = array<i64: 32, 1>}, {pipeline_mode = #tpu.pipeline_mode<synchronous>, transform_indices = @transform_3, window_bounds = array<i64: 32, 1>}, {pipeline_mode = #tpu.pipeline_mode<synchronous>, transform_indices = @transform_4, window_bounds = array<i64: 32, 16>}]} {
    %c0 = arith.constant 0 : index
    %c0_0 = arith.constant 0 : index
    %0 = vector.load %arg2[%c0, %c0_0] : memref<32x16xf32, #tpu.memory_space<vmem>>, vector<32x16xf32>
    %c0_1 = arith.constant 0 : index
    %c0_2 = arith.constant 0 : index
    %1 = vector.load %arg1[%c0_1, %c0_2] : memref<16x16xf32, #tpu.memory_space<vmem>>, vector<16x16xf32>
    %cst = arith.constant dense<0.000000e+00> : vector<32x16xf32>
    %2 = tpu.matmul %0, %1, %cst {dimension_numbers = #tpu.dot_dimension_numbers<[1], [0], [0], [1], [0, 0, 1, 1], [], []>} : vector<32x16xf32>, vector<16x16xf32>, vector<32x16xf32> -> vector<32x16xf32>
    %cst_3 = arith.constant dense<0.000000e+00> : vector<32xf32>
    %3 = vector.multi_reduction <add>, %2, %cst_3 [1] : vector<32x16xf32> to vector<32xf32>
    %4 = vector.shape_cast %3 : vector<32xf32> to vector<32x1xf32>
    %cst_4 = arith.constant 6.250000e-02 : f32
    %5 = vector.broadcast %cst_4 : f32 to vector<32x1xf32>
    %6 = arith.mulf %4, %5 : vector<32x1xf32>
    %7 = vector.broadcast %6 : vector<32x1xf32> to vector<32x16xf32>
    %8 = arith.subf %2, %7 : vector<32x16xf32>
    %9 = arith.mulf %8, %8 : vector<32x16xf32>
    %cst_5 = arith.constant dense<0.000000e+00> : vector<32xf32>
    %10 = vector.multi_reduction <add>, %9, %cst_5 [1] : vector<32x16xf32> to vector<32xf32>
    %11 = vector.shape_cast %10 : vector<32xf32> to vector<32x1xf32>
    %cst_6 = arith.constant 6.250000e-02 : f32
    %12 = vector.broadcast %cst_6 : f32 to vector<32x1xf32>
    %13 = arith.mulf %11, %12 : vector<32x1xf32>
    %cst_7 = arith.constant 9.99999974E-6 : f32
    %14 = vector.broadcast %cst_7 : f32 to vector<32x1xf32>
    %15 = arith.addf %13, %14 : vector<32x1xf32>
    %16 = math.rsqrt %15 : vector<32x1xf32>
    %17 = vector.broadcast %16 : vector<32x1xf32> to vector<32x16xf32>
    %18 = arith.mulf %8, %17 : vector<32x16xf32>
    %c0_8 = arith.constant 0 : index
    %c0_9 = arith.constant 0 : index
    %19 = vector.load %arg3[%c0_8, %c0_9] : memref<32x1xf32, #tpu.memory_space<vmem>>, vector<32x1xf32>
    %20 = vector.broadcast %19 : vector<32x1xf32> to vector<32x16xf32>
    %21 = arith.mulf %18, %20 : vector<32x16xf32>
    %c0_10 = arith.constant 0 : index
    %c0_11 = arith.constant 0 : index
    %22 = vector.load %arg4[%c0_10, %c0_11] : memref<32x1xf32, #tpu.memory_space<vmem>>, vector<32x1xf32>
    %23 = vector.broadcast %22 : vector<32x1xf32> to vector<32x16xf32>
    %24 = arith.addf %21, %23 : vector<32x16xf32>
    %cst_12 = arith.constant 0.000000e+00 : f32
    %25 = vector.broadcast %cst_12 : f32 to vector<32x16xf32>
    %26 = arith.maximumf %24, %25 : vector<32x16xf32>
    %c0_13 = arith.constant 0 : index
    %c0_14 = arith.constant 0 : index
    %27 = vector.load %arg5[%c0_13, %c0_14] : memref<32x16xf32, #tpu.memory_space<vmem>>, vector<32x16xf32>
    tpu.vector_store %arg5[%c0_13, %c0_14], %26 {strides = array<i32>} : memref<32x16xf32, #tpu.memory_space<vmem>>, vector<32x16xf32>,
    return
  }
  func.func @transform_0(%arg0: i32) -> (i32, i32) {
    %c0_i32 = arith.constant 0 : i32
    %c0_i32_0 = arith.constant 0 : i32
    %c0_i32_1 = arith.constant 0 : i32
    return %c0_i32, %c0_i32_0 : i32, i32
  }
  func.func @transform_1(%arg0: i32) -> (i32, i32) {
    %c0_i32 = arith.constant 0 : i32
    %c0_i32_0 = arith.constant 0 : i32
    %c0_i32_1 = arith.constant 0 : i32
    return %c0_i32, %c0_i32_0 : i32, i32
  }
  func.func @transform_2(%arg0: i32) -> (i32, i32) {
    %c0_i32 = arith.constant 0 : i32
    %c0_i32_0 = arith.constant 0 : i32
    %c0_i32_1 = arith.constant 0 : i32
    return %c0_i32, %c0_i32_0 : i32, i32
  }
  func.func @transform_3(%arg0: i32) -> (i32, i32) {
    %c0_i32 = arith.constant 0 : i32
    %c0_i32_0 = arith.constant 0 : i32
    %c0_i32_1 = arith.constant 0 : i32
    return %c0_i32, %c0_i32_0 : i32, i32
  }
  func.func @transform_4(%arg0: i32) -> (i32, i32) {
    %c0_i32 = arith.constant 0 : i32
    %c0_i32_0 = arith.constant 0 : i32
    %c0_i32_1 = arith.constant 0 : i32
    return %c0_i32, %c0_i32_0 : i32, i32
  }
}

</mosaic_0001>

<bundles_post_ra>
// kernel: tpu_custom_call.1
= control target key start
LH: loop header
LB: loop body
LE: loop exit
PB: predicated region body
PF: predicated region fallthrough
CT: control target
= control target key end

     0   :  { %vm23_vm0 = vcmask 130048   ;;  %v276_v14 = vmov 0   ;;  %s382_s0 = inlined_call_operand.vmem [shape: f32[16,16], index: 0, kind: input, shape index: {}]   ;;  %s383_s1 = inlined_call_operand.vmem [shape: f32[32,16], index: 1, kind: input, shape index: {}]   ;;  %s384_s2 = inlined_call_operand.vmem [shape: f32[32,1], index: 2, kind: input, shape index: {}]   ;;  %s385_s3 = inlined_call_operand.vmem [shape: f32[32,1], index: 3, kind: input, shape index: {}]   ;;  %s386_s4 = inlined_call_operand.vmem [shape: f32[32,16], index: 4, kind: output, shape index: {}]  }
   0x1   :  { %v22_v0 = vld [vmem:[%s382_s0 + $0x8] sm:$0xff]  ;;  %v21_v1 = vld [vmem:[%s382_s0] sm:$0xff]  ;;  %v19_v3 = vld [vmem:[%s383_s1 + $0x10] sm:$0xff]  ;;  %267 = vset.pattern.permute.xlu1 %v276_v14  ;;  %266 = vset.pattern.permute.xlu0 %v276_v14 }
   0x2   :  { %251 = vmatprep.subr.mxu0 %v22_v0  ;;  %261 = vmatprep.subr.mxu1 %v22_v0  ;;  %v17_v2 = vld [vmem:[%s383_s1] sm:$0xff]  ;;  %v18_v4 = vld [vmem:[%s383_s1 + $0x8] sm:$0xff]  ;;  %v20_v5 = vld [vmem:[%s383_s1 + $0x18] sm:$0xff] }
   0x3   :  { %252 = vmatpush3.msra.mxu0 %v22_v0  ;;  %263 = vmatpush3.msra.mxu1 %v22_v0  ;;  %v174_v35 = vld [vmem:[%s384_s2 + $0x8] sm:$0xff]  ;;  %v173_v36 = vld [vmem:[%s384_s2] sm:$0xff]  ;;  %v175_v37 = vld [vmem:[%s384_s2 + $0x10] sm:$0xff] }
   0x4   :  { %253 = vmatprep.subr.mxu0 %v21_v1  ;;  %262 = vmatprep.subr.mxu1 %v21_v1  ;;  %v176_v38 = vld [vmem:[%s384_s2 + $0x18] sm:$0xff]  ;;  %v201_v39 = vld [vmem:[%s385_s3] sm:$0xff]  ;;  %v202_v40 = vld [vmem:[%s385_s3 + $0x8] sm:$0xff] }
   0x5   :  { %254 = vmatpush3.msra.mxu0 %v21_v1  ;;  %264 = vmatpush3.msra.mxu1 %v21_v1  ;;  %v203_v41 = vld [vmem:[%s385_s3 + $0x10] sm:$0xff]  ;;  %v204_v42 = vld [vmem:[%s385_s3 + $0x18] sm:$0xff] }
   0x6   :  { %255 = vmatprep.mubr.msk.f32.mxu0 %vm23_vm0, %v17_v2  ;;  %258 = vmatprep.mubr.msk.f32.mxu1 %vm23_vm0, %v19_v3 }
   0x7   :  { %256 = vmatmul.mubr.msk.f32.vlgmr.msra.gmra.mxu0 %vm23_vm0, %v18_v4  ;;  %259 = vmatmul.mubr.msk.f32.vlgmr.msra.gmra.mxu1 %vm23_vm0, %v20_v5 }
  0xc7   :  { %v257_v6 = vpop.f32.mrf.mxu0  ;;  %v260_v7 = vpop.f32.mrf.mxu1 }
  0xc8   :  { %v130_v12 = vsel %vm23_vm0, %v260_v7, 0.0  ;;  %v124_v13 = vsel %vm23_vm0, %v257_v6, 0.0 }
  0xc9   :  { %v102_v8 = vpop.f32.mrf.mxu0  ;;  %v112_v9 = vpop.f32.mrf.mxu1 }
  0xca   :  { %v127_v10 = vsel %vm23_vm0, %v112_v9, 0.0  ;;  %v121_v11 = vsel %vm23_vm0, %v102_v8, 0.0 }
  0xcb   :  { %128 = vadd.xlane.f32.xlu1 %v127_v10  ;;  %122 = vadd.xlane.f32.xlu0 %v121_v11 }
  0xcf   :  { %131 = vadd.xlane.f32.xlu1 %v130_v12  ;;  %125 = vadd.xlane.f32.xlu0 %v124_v13 }
 0x154   :  { %v129_v15 = vpop.xlane.xlu1 %128  ;;  %v123_v16 = vpop.xlane.xlu0 %122 }
 0x155   :  { %v135_v17 = vmul.f32 0.0625, %v129_v15  ;;  %v133_v18 = vmul.f32 0.0625, %v123_v16 }
 0x157   :  { %v328_v19 = vsub.f32 %v112_v9, %v135_v17  ;;  %v137_v20 = vsub.f32 %v102_v8, %v133_v18 }
 0x158   :  { %v132_v21 = vpop.xlane.xlu1 %131  ;;  %v126_v22 = vpop.xlane.xlu0 %125 }
 0x159   :  { %v136_v23 = vmul.f32 0.0625, %v132_v21  ;;  %v134_v24 = vmul.f32 0.0625, %v126_v22  ;;  %v141_v25 = vmul.f32 %v137_v20, %v137_v20  ;;  %v143_v29 = vmul.f32 %v328_v19, %v328_v19 }
 0x15b   :  { %v330_v26 = vsub.f32 %v260_v7, %v136_v23  ;;  %v138_v27 = vsub.f32 %v257_v6, %v134_v24  ;;  %v145_v28 = vsel %vm23_vm0, %v141_v25, 0.0  ;;  %v151_v31 = vsel %vm23_vm0, %v143_v29, 0.0 }
 0x15c   :  { %146 = vadd.xlane.f32.xlu0 %v145_v28 }
 0x15d   :  { %v142_v30 = vmul.f32 %v138_v27, %v138_v27  ;;  %v144_v33 = vmul.f32 %v330_v26, %v330_v26 }
 0x15f   :  { %v148_v32 = vsel %vm23_vm0, %v142_v30, 0.0  ;;  %v154_v34 = vsel %vm23_vm0, %v144_v33, 0.0 }
 0x160   :  { %152 = vadd.xlane.f32.xlu0 %v151_v31  ;;  %149 = vadd.xlane.f32.xlu1 %v148_v32 }
 0x164   :  { %155 = vadd.xlane.f32.xlu1 %v154_v34 }
 0x175   :  { %184 = vperm.xlu1 %267, %v174_v35  }
 0x176   :  { %179 = vperm.xlu0 %266, %v173_v36  }
 0x179   :  { %189 = vperm.xlu1 %267, %v175_v37  }
 0x17d   :  { %194 = vperm.xlu1 %267, %v176_v38  }
 0x181   :  { %207 = vperm.xlu1 %267, %v201_v39  }
 0x185   :  { %212 = vperm.xlu1 %267, %v202_v40  }
 0x189   :  { %217 = vperm.xlu1 %267, %v203_v41  }
 0x18d   :  { %222 = vperm.xlu1 %267, %v204_v42  }
 0x1e5   :  { %v147_v43 = vpop.xlane.xlu0 %146 }
 0x1e6   :  { %v157_v44 = vmul.f32 0.0625, %v147_v43 }
 0x1e8   :  { %v161_v45 = vadd.f32 1e-05, %v157_v44 }
 0x1e9   :  { %v150_v46 = vpop.xlane.xlu1 %149  ;;  %v153_v47 = vpop.xlane.xlu0 %152 }
 0x1ea   :  { %268 = vrsqrt.f32 %v161_v45  ;;  %v158_v48 = vmul.f32 0.0625, %v150_v46  ;;  %v159_v49 = vmul.f32 0.0625, %v153_v47 }
 0x1ec   :  { %v162_v50 = vadd.f32 1e-05, %v158_v48  ;;  %v163_v51 = vadd.f32 1e-05, %v159_v49 }
 0x1ed   :  { %v156_v52 = vpop.xlane.xlu1 %155 }
 0x1ee   :  { %270 = vrsqrt.f32 %v162_v50  ;;  %v160_v53 = vmul.f32 0.0625, %v156_v52 }
 0x1ef   :  { %272 = vrsqrt.f32 %v163_v51 }
 0x1f0   :  { %v164_v54 = vadd.f32 1e-05, %v160_v53 }
 0x1f1   :  { %v185_v55 = vpop.permute.xlu1 %184  ;;  %v180_v60 = vpop.permute.xlu0 %179 }
 0x1f2   :  { %274 = vrsqrt.f32 %v164_v54 }
 0x1f5   :  { %v190_v56 = vpop.permute.xlu1 %189 }
 0x1f7   :  { %v269_v57 = vpop.eup %268 }
 0x1f8   :  { %v169_v58 = vmul.f32 %v269_v57, %v137_v20 }
 0x1f9   :  { %v195_v59 = vpop.permute.xlu1 %194 }
 0x1fa   :  { %v197_v63 = vmul.f32 %v180_v60, %v169_v58 }
 0x1fb   :  { %v271_v61 = vpop.eup %270 }
 0x1fc   :  { %v170_v62 = vmul.f32 %v271_v61, %v138_v27  ;;  %v273_v0 = vpop.eup %272 }
 0x1fd   :  { %v208_v1 = vpop.permute.xlu1 %207  ;;  %v171_v4 = vmul.f32 %v273_v0, %v328_v19 }
 0x1fe   :  { %v225_v2 = vadd.f32 %v208_v1, %v197_v63  ;;  %v198_v3 = vmul.f32 %v185_v55, %v170_v62 }
 0x1ff   :  { %v275_v6 = vpop.eup %274  ;;  %v199_v9 = vmul.f32 %v190_v56, %v171_v4 }
 0x200   :  { %v229_v5 = vmax.f32 %v225_v2, 0.0  ;;  %v172_v10 = vmul.f32 %v275_v6, %v330_v26 }
 0x201   :  { %v213_v7 = vpop.permute.xlu1 %212 }
 0x202   :  { %233 = vst.msk [vmem:[%s386_s4] sm:$0xff] %vm23_vm0, %v229_v5  ;;  %v226_v8 = vadd.f32 %v213_v7, %v198_v3  ;;  %v200_v14 = vmul.f32 %v195_v59, %v172_v10 }
 0x204   :  { %v230_v11 = vmax.f32 %v226_v8, 0.0 }
 0x205   :  { %v218_v12 = vpop.permute.xlu1 %217 }
 0x206   :  { %234 = vst.msk [vmem:[%s386_s4 + $0x8] sm:$0xff] %vm23_vm0, %v230_v11  ;;  %v227_v13 = vadd.f32 %v218_v12, %v199_v9 }
 0x208   :  { %v231_v15 = vmax.f32 %v227_v13, 0.0 }
 0x209   :  { %v223_v16 = vpop.permute.xlu1 %222 }
 0x20a   :  { %235 = vst.msk [vmem:[%s386_s4 + $0x10] sm:$0xff] %vm23_vm0, %v231_v15  ;;  %v228_v17 = vadd.f32 %v223_v16, %v200_v14 }
 0x20c   :  { %v232_v18 = vmax.f32 %v228_v17, 0.0 }
 0x20e   :  { %236 = vst.msk [vmem:[%s386_s4 + $0x18] sm:$0xff] %vm23_vm0, %v232_v18 }

</bundles_post_ra>
